<compile_context>
chip_gen: v5e
topology: v5e:2x2
jax: 0.10.0
libtpu: 0.0.40
codegen_flags: <defaults>
</compile_context>

<pallas_src>
import functools

import jax
import jax.numpy as jnp
import numpy as np
from jax.experimental import pallas as pl


def _round_up(n, m):
    return ((n + m - 1) // m) * m


def _rnn_kernel(x_ref, vecs_ref, wpack_ref, out_ref, *, D, H, O, Dp, Hp):
    L = x_ref.shape[0]

    # Unpack the single packed-weight operand with static (sublane-aligned) slices.
    w_ih_t = wpack_ref[0:D, :]                       # (D, H) bf16
    w_hh_t = wpack_ref[Dp:Dp + H, :]                 # (H, H) bf16
    w_out_t = wpack_ref[Dp + Hp:Dp + Hp + H, :]      # (H, H) bf16 (cols >= O zero)

    b = vecs_ref[0:1, :]                             # (1, H) f32  (= b_ih + b_hh)
    h0 = vecs_ref[1:2, :]                            # (1, H) f32
    b_out = vecs_ref[2:3, :]                         # (1, H) f32  (cols >= O zero)

    # 1) Batched input projection for all time steps at once (one MXU matmul):
    #      gates = x @ W_ih^T + (b_ih + b_hh)        -> (L, H) f32
    gates = jnp.dot(x_ref[...].astype(jnp.bfloat16), w_ih_t,
                    preferred_element_type=jnp.float32) + b

    # Pre-slice the per-step gate rows so the serial chain below is only
    # MXU dot -> VPU add -> EUP tanh (sublane extracts kept off the chain).
    gate_rows = [gates[t:t + 1, :] for t in range(L)]

    # 2) Serial recurrence. L is small & static -> fully unrolled; h and the
    #    whole hidden-state history live in vregs (no VMEM scratch round-trip).
    # TODO(synk): for large L switch to lax.fori_loop(..., unroll=8) writing
    #             an (L, H) VMEM scratch instead of the vreg-resident history.
    h = h0.astype(jnp.bfloat16)                      # (1, H)
    hs = []
    for t in range(L):
        pre = gate_rows[t] + jnp.dot(h, w_hh_t,
                                     preferred_element_type=jnp.float32)
        h_f32 = jnp.tanh(pre)                        # (1, H) f32
        hs.append(h_f32)
        h = h_f32.astype(jnp.bfloat16)

    h_all = jnp.concatenate(hs, axis=0)              # (L, H), one vreg at L=8

    # 3) Batched output projection + a single 2-D store.
    y = jnp.dot(h_all.astype(jnp.bfloat16), w_out_t,
                preferred_element_type=jnp.float32) + b_out
    out_ref[...] = y[:, 0:O].astype(out_ref.dtype)


def pack_params(w_ih, w_hh, b_ih, b_hh, w_out, b_out, h0):
    """One-time packing of all parameters into two tiny operands (off the
    forward path): a (3, H) f32 vector block and one contiguous bf16 weight
    block holding W_ih^T, W_hh^T, W_out^T (lane-padded to H columns)."""
    H, D = w_ih.shape
    O = w_out.shape[0]
    Dp, Hp = _round_up(D, 8), _round_up(H, 8)

    vecs = jnp.zeros((3, H), jnp.float32)
    vecs = vecs.at[0, :].set(b_ih + b_hh)
    vecs = vecs.at[1, :].set(h0.reshape(-1))
    vecs = vecs.at[2, :O].set(b_out)

    wpack = jnp.zeros((Dp + 2 * Hp, H), jnp.bfloat16)
    wpack = wpack.at[0:D, :].set(w_ih.T.astype(jnp.bfloat16))
    wpack = wpack.at[Dp:Dp + H, :].set(w_hh.T.astype(jnp.bfloat16))
    wpack = wpack.at[Dp + Hp:Dp + Hp + H, 0:O].set(w_out.T.astype(jnp.bfloat16))
    return vecs, wpack


def my_rnn_forward(x, vecs, wpack, *, input_size, hidden_size, output_size):
    """x: (L, D) float32. Returns (L, O) float32.  Zero per-call glue ops:
    a single grid-less pallas_call with 3 operands, everything VMEM-resident."""
    L = x.shape[0]
    D, H, O = input_size, hidden_size, output_size
    Dp, Hp = _round_up(D, 8), _round_up(H, 8)
    kernel = functools.partial(_rnn_kernel, D=D, H=H, O=O, Dp=Dp, Hp=Hp)
    return pl.pallas_call(
        kernel,
        out_shape=jax.ShapeDtypeStruct((L, O), jnp.float32),
    )(x, vecs, wpack)


def _reference(x, h0, w_ih, w_hh, b_ih, b_hh, w_out, b_out):
    def step(h, x_t):
        h_new = jnp.tanh(x_t @ w_ih.T + b_ih + h @ w_hh.T + b_hh)
        return h_new, h_new @ w_out.T + b_out
    _, ys = jax.lax.scan(step, h0.reshape(-1), x)
    return ys


if __name__ == "__main__":
    seq_len = 8
    input_shape = 16
    hidden_size = 32
    output_size = 8

    key = jax.random.PRNGKey(0)
    keys = jax.random.split(key, 8)

    # Deterministic parameter init (PyTorch-style uniform(-1/sqrt(H), 1/sqrt(H))).
    k = 1.0 / np.sqrt(hidden_size)
    w_ih = jax.random.uniform(keys[0], (hidden_size, input_shape), jnp.float32, -k, k)
    w_hh = jax.random.uniform(keys[1], (hidden_size, hidden_size), jnp.float32, -k, k)
    b_ih = jax.random.uniform(keys[2], (hidden_size,), jnp.float32, -k, k)
    b_hh = jax.random.uniform(keys[3], (hidden_size,), jnp.float32, -k, k)
    w_out = jax.random.uniform(keys[4], (output_size, hidden_size), jnp.float32, -k, k)
    b_out = jax.random.uniform(keys[5], (output_size,), jnp.float32, -k, k)

    # The PyTorch forward draws h0 ~ randn(1, hidden) each call; we use a
    # deterministic draw here to keep the script reproducible.
    # TODO(synk): per-call torch.randn h0 is modeled as an explicit input.
    h0 = jax.random.normal(keys[6], (1, hidden_size), jnp.float32)
    x = jax.random.normal(keys[7], (seq_len, input_shape), jnp.float32)

    # One-time parameter packing (off the forward path).
    vecs, wpack = pack_params(w_ih, w_hh, b_ih, b_hh, w_out, b_out, h0)

    out = my_rnn_forward(x, vecs, wpack,
                         input_size=input_shape,
                         hidden_size=hidden_size,
                         output_size=output_size)
    out = jax.block_until_ready(out)

    ref = _reference(x, h0, w_ih, w_hh, b_ih, b_hh, w_out, b_out)
    assert out.shape == (seq_len, output_size)
    # Tolerance relaxed vs. the f32 reference because weights/activations are
    # fed to the MXU in bf16 (error a few 1e-3 at H=32; verified well inside).
    np.testing.assert_allclose(np.asarray(out), np.asarray(ref), rtol=2e-2, atol=2e-2)

    print("KERNEL_OK")
</pallas_src>

<mosaic_0001>
module attributes {stable_mosaic.version = 11 : i64} {
  func.func @_rnn_kernel(%arg0: memref<8x16xf32, #tpu.memory_space<vmem>>, %arg1: memref<3x32xf32, #tpu.memory_space<vmem>>, %arg2: memref<80x32xbf16, #tpu.memory_space<vmem>>, %arg3: memref<8x8xf32, #tpu.memory_space<vmem>>) attributes {dimension_semantics = [], scalar_prefetch = 0 : i64, scratch_operands = 0 : i64, tpu.core_type = #tpu.core_type<tc>} {
    %c0 = arith.constant 0 : index
    %c0_0 = arith.constant 0 : index
    %0 = vector.load %arg2[%c0, %c0_0] : memref<80x32xbf16, #tpu.memory_space<vmem>>, vector<16x32xbf16>
    %c16 = arith.constant 16 : index
    %c0_1 = arith.constant 0 : index
    %1 = vector.load %arg2[%c16, %c0_1] : memref<80x32xbf16, #tpu.memory_space<vmem>>, vector<32x32xbf16>
    %c48 = arith.constant 48 : index
    %c0_2 = arith.constant 0 : index
    %2 = vector.load %arg2[%c48, %c0_2] : memref<80x32xbf16, #tpu.memory_space<vmem>>, vector<32x32xbf16>
    %c0_3 = arith.constant 0 : index
    %c0_4 = arith.constant 0 : index
    %3 = vector.load %arg1[%c0_3, %c0_4] : memref<3x32xf32, #tpu.memory_space<vmem>>, vector<1x32xf32>
    %c1 = arith.constant 1 : index
    %c0_5 = arith.constant 0 : index
    %4 = vector.load %arg1[%c1, %c0_5] : memref<3x32xf32, #tpu.memory_space<vmem>>, vector<1x32xf32>
    %c2 = arith.constant 2 : index
    %c0_6 = arith.constant 0 : index
    %5 = vector.load %arg1[%c2, %c0_6] : memref<3x32xf32, #tpu.memory_space<vmem>>, vector<1x32xf32>
    %c0_7 = arith.constant 0 : index
    %c0_8 = arith.constant 0 : index
    %6 = vector.load %arg0[%c0_7, %c0_8] : memref<8x16xf32, #tpu.memory_space<vmem>>, vector<8x16xf32>
    %7 = arith.truncf %6 : vector<8x16xf32> to vector<8x16xbf16>
    %cst = arith.constant dense<0.000000e+00> : vector<8x32xf32>
    %8 = tpu.matmul %7, %0, %cst {dimension_numbers = #tpu.dot_dimension_numbers<[1], [0], [0], [1], [0, 0, 1, 1], [], []>} : vector<8x16xbf16>, vector<16x32xbf16>, vector<8x32xf32> -> vector<8x32xf32>
    %9 = vector.broadcast %3 : vector<1x32xf32> to vector<8x32xf32>
    %10 = arith.addf %8, %9 : vector<8x32xf32>
    %11 = vector.extract_strided_slice %10 {offsets = [0, 0], sizes = [1, 32], strides = [1, 1]} : vector<8x32xf32> to vector<1x32xf32>
    %12 = vector.extract_strided_slice %10 {offsets = [1, 0], sizes = [1, 32], strides = [1, 1]} : vector<8x32xf32> to vector<1x32xf32>
    %13 = vector.extract_strided_slice %10 {offsets = [2, 0], sizes = [1, 32], strides = [1, 1]} : vector<8x32xf32> to vector<1x32xf32>
    %14 = vector.extract_strided_slice %10 {offsets = [3, 0], sizes = [1, 32], strides = [1, 1]} : vector<8x32xf32> to vector<1x32xf32>
    %15 = vector.extract_strided_slice %10 {offsets = [4, 0], sizes = [1, 32], strides = [1, 1]} : vector<8x32xf32> to vector<1x32xf32>
    %16 = vector.extract_strided_slice %10 {offsets = [5, 0], sizes = [1, 32], strides = [1, 1]} : vector<8x32xf32> to vector<1x32xf32>
    %17 = vector.extract_strided_slice %10 {offsets = [6, 0], sizes = [1, 32], strides = [1, 1]} : vector<8x32xf32> to vector<1x32xf32>
    %18 = vector.extract_strided_slice %10 {offsets = [7, 0], sizes = [1, 32], strides = [1, 1]} : vector<8x32xf32> to vector<1x32xf32>
    %19 = arith.truncf %4 : vector<1x32xf32> to vector<1x32xbf16>
    %cst_9 = arith.constant dense<0.000000e+00> : vector<1x32xf32>
    %20 = tpu.matmul %19, %1, %cst_9 {dimension_numbers = #tpu.dot_dimension_numbers<[1], [0], [0], [1], [0, 0, 1, 1], [], []>} : vector<1x32xbf16>, vector<32x32xbf16>, vector<1x32xf32> -> vector<1x32xf32>
    %21 = arith.addf %11, %20 : vector<1x32xf32>
    %22 = math.tanh %21 : vector<1x32xf32>
    %23 = arith.truncf %22 : vector<1x32xf32> to vector<1x32xbf16>
    %cst_10 = arith.constant dense<0.000000e+00> : vector<1x32xf32>
    %24 = tpu.matmul %23, %1, %cst_10 {dimension_numbers = #tpu.dot_dimension_numbers<[1], [0], [0], [1], [0, 0, 1, 1], [], []>} : vector<1x32xbf16>, vector<32x32xbf16>, vector<1x32xf32> -> vector<1x32xf32>
    %25 = arith.addf %12, %24 : vector<1x32xf32>
    %26 = math.tanh %25 : vector<1x32xf32>
    %27 = arith.truncf %26 : vector<1x32xf32> to vector<1x32xbf16>
    %cst_11 = arith.constant dense<0.000000e+00> : vector<1x32xf32>
    %28 = tpu.matmul %27, %1, %cst_11 {dimension_numbers = #tpu.dot_dimension_numbers<[1], [0], [0], [1], [0, 0, 1, 1], [], []>} : vector<1x32xbf16>, vector<32x32xbf16>, vector<1x32xf32> -> vector<1x32xf32>
    %29 = arith.addf %13, %28 : vector<1x32xf32>
    %30 = math.tanh %29 : vector<1x32xf32>
    %31 = arith.truncf %30 : vector<1x32xf32> to vector<1x32xbf16>
    %cst_12 = arith.constant dense<0.000000e+00> : vector<1x32xf32>
    %32 = tpu.matmul %31, %1, %cst_12 {dimension_numbers = #tpu.dot_dimension_numbers<[1], [0], [0], [1], [0, 0, 1, 1], [], []>} : vector<1x32xbf16>, vector<32x32xbf16>, vector<1x32xf32> -> vector<1x32xf32>
    %33 = arith.addf %14, %32 : vector<1x32xf32>
    %34 = math.tanh %33 : vector<1x32xf32>
    %35 = arith.truncf %34 : vector<1x32xf32> to vector<1x32xbf16>
    %cst_13 = arith.constant dense<0.000000e+00> : vector<1x32xf32>
    %36 = tpu.matmul %35, %1, %cst_13 {dimension_numbers = #tpu.dot_dimension_numbers<[1], [0], [0], [1], [0, 0, 1, 1], [], []>} : vector<1x32xbf16>, vector<32x32xbf16>, vector<1x32xf32> -> vector<1x32xf32>
    %37 = arith.addf %15, %36 : vector<1x32xf32>
    %38 = math.tanh %37 : vector<1x32xf32>
    %39 = arith.truncf %38 : vector<1x32xf32> to vector<1x32xbf16>
    %cst_14 = arith.constant dense<0.000000e+00> : vector<1x32xf32>
    %40 = tpu.matmul %39, %1, %cst_14 {dimension_numbers = #tpu.dot_dimension_numbers<[1], [0], [0], [1], [0, 0, 1, 1], [], []>} : vector<1x32xbf16>, vector<32x32xbf16>, vector<1x32xf32> -> vector<1x32xf32>
    %41 = arith.addf %16, %40 : vector<1x32xf32>
    %42 = math.tanh %41 : vector<1x32xf32>
    %43 = arith.truncf %42 : vector<1x32xf32> to vector<1x32xbf16>
    %cst_15 = arith.constant dense<0.000000e+00> : vector<1x32xf32>
    %44 = tpu.matmul %43, %1, %cst_15 {dimension_numbers = #tpu.dot_dimension_numbers<[1], [0], [0], [1], [0, 0, 1, 1], [], []>} : vector<1x32xbf16>, vector<32x32xbf16>, vector<1x32xf32> -> vector<1x32xf32>
    %45 = arith.addf %17, %44 : vector<1x32xf32>
    %46 = math.tanh %45 : vector<1x32xf32>
    %47 = arith.truncf %46 : vector<1x32xf32> to vector<1x32xbf16>
    %cst_16 = arith.constant dense<0.000000e+00> : vector<1x32xf32>
    %48 = tpu.matmul %47, %1, %cst_16 {dimension_numbers = #tpu.dot_dimension_numbers<[1], [0], [0], [1], [0, 0, 1, 1], [], []>} : vector<1x32xbf16>, vector<32x32xbf16>, vector<1x32xf32> -> vector<1x32xf32>
    %49 = arith.addf %18, %48 : vector<1x32xf32>
    %50 = math.tanh %49 : vector<1x32xf32>
    %51 = tpu.concatenate %22, %26, %30, %34, %38, %42, %46, %50 in 0 : vector<1x32xf32>, vector<1x32xf32>, vector<1x32xf32>, vector<1x32xf32>, vector<1x32xf32>, vector<1x32xf32>, vector<1x32xf32>, vector<1x32xf32> -> vector<8x32xf32>
    %52 = arith.truncf %51 : vector<8x32xf32> to vector<8x32xbf16>
    %cst_17 = arith.constant dense<0.000000e+00> : vector<8x32xf32>
    %53 = tpu.matmul %52, %2, %cst_17 {dimension_numbers = #tpu.dot_dimension_numbers<[1], [0], [0], [1], [0, 0, 1, 1], [], []>} : vector<8x32xbf16>, vector<32x32xbf16>, vector<8x32xf32> -> vector<8x32xf32>
    %54 = vector.broadcast %5 : vector<1x32xf32> to vector<8x32xf32>
    %55 = arith.addf %53, %54 : vector<8x32xf32>
    %56 = vector.extract_strided_slice %55 {offsets = [0, 0], sizes = [8, 8], strides = [1, 1]} : vector<8x32xf32> to vector<8x8xf32>
    %c0_18 = arith.constant 0 : index
    %c0_19 = arith.constant 0 : index
    %57 = vector.load %arg3[%c0_18, %c0_19] : memref<8x8xf32, #tpu.memory_space<vmem>>, vector<8x8xf32>
    tpu.vector_store %arg3[%c0_18, %c0_19], %56 {strides = array<i32>} : memref<8x8xf32, #tpu.memory_space<vmem>>, vector<8x8xf32>,
    return
  }
}

</mosaic_0001>

<bundles_post_ra>
// kernel: tpu_custom_call.1
= control target key start
LH: loop header
LB: loop body
LE: loop exit
PB: predicated region body
PF: predicated region fallthrough
CT: control target
= control target key end

     0   :  { %vm38_vm0 = vcmask 130048   ;;  %s470_s0 = inlined_call_operand.vmem [shape: f32[8,16], index: 0, kind: input, shape index: {}]   ;;  %s471_s1 = inlined_call_operand.vmem [shape: f32[3,32], index: 1, kind: input, shape index: {}]   ;;  %s472_s2 = inlined_call_operand.vmem [shape: bf16[80,32], index: 2, kind: input, shape index: {}]   ;;  %s473_s3 = inlined_call_operand.hbm [shape: f32[8,8], index: 3, kind: output, shape index: {}]  }
   0x1   :  { %v350_v0 = vld [vmem:[%s472_s2] sm:$0xff]  ;;  %v352_v1 = vld [vmem:[%s472_s2 + $0x10] sm:$0xff]  ;;  %v351_v4 = vld [vmem:[%s472_s2 + $0x8] sm:$0xff] }
   0x2   :  { %v29_v2 = vld [vmem:[%s470_s0] sm:$0xff]  ;;  %49 = vmatpush.bf16.msra.mxu0 %v350_v0  ;;  %78 = vmatpush.bf16.msra.mxu1 %v352_v1 }
   0x3   :  { %v30_v3 = vpack.c.bf16 %v29_v2, %v29_v2  ;;  %v27_v5 = vld [vmem:[%s471_s1 + $0x1] sm:$0x1] }
   0x4   :  { %8 = vsyncpa [#allocation3], 0  ;;  %97 = vmatpush.bf16.msra.mxu2 %v352_v1  ;;  %122 = vmatpush.bf16.msra.mxu3 %v352_v1  ;;  %v55_v6 = vpack.c.bf16 %v27_v5, %v27_v5  ;;  %vm68_vm1 = vcmask 261120   ;;  %v356_v7 = vld [vmem:[%s471_s1] ss:$0 sm:$0xff]  ;;  %vm258_vm2 = vcmask 1040384  }
   0x5   :  { %324 = vmatmul.msk.bf16.vlgmr.msra.gmra.mxu0 %vm38_vm0, %v30_v3  ;;  %vm260_vm3 = vcmask 1041408   ;;  %vm262_vm4 = vcmask 1042432   ;;  %vm264_vm5 = vcmask 1043456   ;;  %vm266_vm6 = vcmask 1044480   ;;  %v354_v58 = vld [vmem:[%s472_s2 + $0x20] sm:$0xff]  ;;  %v353_v3 = vld [vmem:[%s472_s2 + $0x18] sm:$0xff] }
   0x6   :  { %146 = vmatpush.bf16.msrb.mxu0 %v352_v1  ;;  %79 = vmatpush.bf16.msra.mxu1 %v351_v4  ;;  %vm268_vm7 = vcmask 1045504   ;;  %vm270_vm8 = vcmask 1046528   ;;  %s400_s29 = smov [#allocation2]   ;;  %s311_s5 = sshll.u32 %s473_s3, 4  ;;  %vm302_vm9 = vcmask 64512   ;;  %s312_s5 = int_to_ptr.hbm [resolvable:$true] %s311_s5 }
   0x7   :  { %s309_s30 = sshll.u32 %s400_s29, 4  ;;  %s310_s30 = int_to_ptr.vmem [resolvable:$true] %s309_s30 }
   0x8   :  { %98 = vmatpush.bf16.msra.mxu2 %v351_v4  ;;  %123 = vmatpush.bf16.msra.mxu3 %v351_v4 }
   0x9   :  { %333 = vmatmul.msk.bf16.vlgmr.msra.gmra.mxu1 %vm68_vm1, %v55_v6 }
   0xa   :  { %147 = vmatpush.bf16.msrb.mxu0 %v351_v4  ;;  %172 = vmatpush.bf16.msrb.mxu1 %v352_v1 }
   0xc   :  { %196 = vmatpush.bf16.msrb.mxu2 %v352_v1  ;;  %222 = vmatpush.bf16.msrb.mxu3 %v352_v1 }
   0xe   :  { %246 = vmatpush.bf16.msra.mxu0 %v352_v1  ;;  %173 = vmatpush.bf16.msrb.mxu1 %v351_v4 }
  0x10   :  { %197 = vmatpush.bf16.msrb.mxu2 %v351_v4  ;;  %223 = vmatpush.bf16.msrb.mxu3 %v351_v4 }
  0x12   :  { %247 = vmatpush.bf16.msra.mxu0 %v351_v4  ;;  %295 = vmatpush.bf16.msra.mxu1 %v354_v58 }
  0x16   :  { %296 = vmatpush.bf16.msra.mxu1 %v353_v3 }
  0x82   :  { %v51_v8 = vpop.f32.mrf.mxu0 }
  0x83   :  { %v440_v9 = vadd.f32 %v356_v7, %v51_v8 }
  0x86   :  { %v81_v10 = vpop.f32.mrf.mxu1 }
  0x87   :  { %v85_v11 = vadd.f32 %v81_v10, %v440_v9 }
  0x89   :  { %358 = vtanh.f32 %v85_v11 }
  0x8a   :  { %v53_v12 = vpop.f32.mrf.mxu0 }
  0x8b   :  { %v357_v12 = vld [vmem:[%s471_s1 + $0x2] ss:$0 sm:$0xff] }
  0x8e   :  { %v83_v13 = vpop.f32.mrf.mxu1 }
  0x8f   :  { %v359_v14 = vpop.eup %358 }
  0x90   :  { %v87_v15 = vpack.c.bf16 %v359_v14, %v359_v14 }
  0x92   :  { %334 = vmatmul.msk.bf16.vlgmr.msra.gmra.mxu2 %vm68_vm1, %v87_v15 }
 0x115   :  { %v100_v16 = vpop.f32.mrf.mxu2 }
 0x116   :  { %v105_v17 = vrot.slane %v100_v16, 7 }
 0x118   :  { %v107_v18 = vadd.f32 %v105_v17, %v440_v9 }
 0x11a   :  { %360 = vtanh.f32 %v107_v18 }
 0x11d   :  { %v102_v19 = vpop.f32.mrf.mxu2 }
 0x120   :  { %v361_v20 = vpop.eup %360 }
 0x121   :  { %v109_v21 = vpack.c.bf16 %v361_v20, %v361_v20  ;;  %v259_v28 = vsel %vm258_vm2, %v359_v14, %v361_v20 }
 0x123   :  { %v111_v22 = vshrl.u32 %v109_v21, 16 }
 0x125   :  { %335 = vmatmul.msk.bf16.vlgmr.msra.gmra.mxu3 %vm68_vm1, %v111_v22 }
 0x1a8   :  { %v125_v23 = vpop.f32.mrf.mxu3 }
 0x1a9   :  { %v130_v24 = vrot.slane %v125_v23, 6 }
 0x1ab   :  { %v132_v25 = vadd.f32 %v130_v24, %v440_v9 }
 0x1ad   :  { %362 = vtanh.f32 %v132_v25 }
 0x1b0   :  { %v127_v26 = vpop.f32.mrf.mxu3 }
 0x1b3   :  { %v363_v27 = vpop.eup %362 }
 0x1b4   :  { %v261_v29 = vsel %vm260_vm3, %v259_v28, %v363_v27  ;;  %v134_v30 = vpack.c.bf16 %v363_v27, %v363_v27 }
 0x1b6   :  { %v136_v31 = vrot.slane %v134_v30, 1 }
 0x1b8   :  { %336 = vmatmul.msk.bf16.vlgmr.msrb.gmra.mxu0 %vm68_vm1, %v136_v31 }
 0x235   :  { %v149_v32 = vpop.f32.mrf.mxu0 }
 0x236   :  { %v154_v33 = vrot.slane %v149_v32, 5 }
 0x238   :  { %v156_v34 = vadd.f32 %v154_v33, %v440_v9 }
 0x23a   :  { %364 = vtanh.f32 %v156_v34 }
 0x23d   :  { %v151_v35 = vpop.f32.mrf.mxu0 }
 0x240   :  { %v365_v36 = vpop.eup %364 }
 0x241   :  { %v263_v37 = vsel %vm262_vm4, %v261_v29, %v365_v36  ;;  %v158_v38 = vpack.c.bf16 %v365_v36, %v365_v36 }
 0x243   :  { %v160_v39 = vshrl.u32 %v158_v38, 16 }
 0x245   :  { %v162_v40 = vrot.slane %v160_v39, 1 }
 0x247   :  { %337 = vmatmul.msk.bf16.vlgmr.msrb.gmra.mxu1 %vm68_vm1, %v162_v40 }
 0x2c4   :  { %v175_v41 = vpop.f32.mrf.mxu1 }
 0x2c5   :  { %v180_v42 = vrot.slane %v175_v41, 4 }
 0x2c7   :  { %v182_v43 = vadd.f32 %v180_v42, %v440_v9 }
 0x2c9   :  { %366 = vtanh.f32 %v182_v43 }
 0x2cc   :  { %v177_v44 = vpop.f32.mrf.mxu1 }
 0x2cf   :  { %v367_v45 = vpop.eup %366 }
 0x2d0   :  { %v265_v46 = vsel %vm264_vm5, %v263_v37, %v367_v45  ;;  %v184_v47 = vpack.c.bf16 %v367_v45, %v367_v45 }
 0x2d2   :  { %v186_v48 = vrot.slane %v184_v47, 2 }
 0x2d4   :  { %338 = vmatmul.msk.bf16.vlgmr.msrb.gmra.mxu2 %vm68_vm1, %v186_v48 }
 0x357   :  { %v199_v49 = vpop.f32.mrf.mxu2 }
 0x358   :  { %v204_v50 = vrot.slane %v199_v49, 3 }
 0x35a   :  { %v206_v51 = vadd.f32 %v204_v50, %v440_v9 }
 0x35c   :  { %368 = vtanh.f32 %v206_v51 }
 0x35f   :  { %v201_v52 = vpop.f32.mrf.mxu2 }
 0x362   :  { %v369_v53 = vpop.eup %368 }
 0x363   :  { %v208_v54 = vpack.c.bf16 %v369_v53, %v369_v53  ;;  %v267_v55 = vsel %vm266_vm6, %v265_v46, %v369_v53 }
 0x365   :  { %v210_v56 = vshrl.u32 %v208_v54, 16 }
 0x367   :  { %v212_v57 = vrot.slane %v210_v56, 2 }
 0x369   :  { %339 = vmatmul.msk.bf16.vlgmr.msrb.gmra.mxu3 %vm68_vm1, %v212_v57 }
 0x3ec   :  { %v225_v59 = vpop.f32.mrf.mxu3 }
 0x3ed   :  { %v230_v60 = vrot.slane %v225_v59, 2 }
 0x3ef   :  { %v232_v61 = vadd.f32 %v230_v60, %v440_v9 }
 0x3f1   :  { %370 = vtanh.f32 %v232_v61 }
 0x3f4   :  { %v227_v62 = vpop.f32.mrf.mxu3 }
 0x3f7   :  { %v371_v63 = vpop.eup %370 }
 0x3f8   :  { %v234_v0 = vpack.c.bf16 %v371_v63, %v371_v63  ;;  %v269_v1 = vsel %vm268_vm7, %v267_v55, %v371_v63 }
 0x3fa   :  { %v236_v2 = vrot.slane %v234_v0, 3 }
 0x3fc   :  { %340 = vmatmul.msk.bf16.vlgmr.msra.gmra.mxu0 %vm68_vm1, %v236_v2 }
 0x479   :  { %v249_v4 = vpop.f32.mrf.mxu0 }
 0x47a   :  { %v254_v5 = vrot.slane %v249_v4, 1 }
 0x47c   :  { %v256_v6 = vadd.f32 %v254_v5, %v440_v9 }
 0x47e   :  { %372 = vtanh.f32 %v256_v6 }
 0x481   :  { %v251_v7 = vpop.f32.mrf.mxu0 }
 0x484   :  { %v373_v8 = vpop.eup %372 }
 0x485   :  { %v271_v10 = vsel %vm270_vm8, %v269_v1, %v373_v8 }
 0x486   :  { %v272_v11 = vpack.c.bf16 %v271_v10, %v271_v10 }
 0x488   :  { %349 = vmatmul.msk.bf16.vlgmr.msra.gmra.mxu1 %vm68_vm1, %v272_v11 }
 0x505   :  { %v298_v13 = vpop.f32.mrf.mxu1 }
 0x506   :  { %v299_v9 = vadd.f32 %v357_v12, %v298_v13 }
 0x508   :  { %303 = vst.msk [vmem:[#allocation2] sm:$0xff] %vm302_vm9, %v299_v9 }
 0x509   :  { %314 = dma.vmem_to_hbm [thread:$0]  %s310_s30, 128, %s312_s5, [#allocation3]  }
 0x50d   :  { %v300_v14 = vpop.f32.mrf.mxu1 }
 0x50e   :  { %398 = dma.done.wait [#allocation3], 128  }
 0x50f   :  { %399 = vsyncadd [#allocation3], 4294967168 }
 0x510   :  { %319 = vsyncpa [#allocation3], 1 }

</bundles_post_ra>
